<compile_context>
chip_gen: v7x
topology: tpu7x:2x2x1
jax: 0.10.0
libtpu: 0.0.40
codegen_flags: <defaults>
</compile_context>

<pallas_src>
import jax
import jax.numpy as jnp
from jax.experimental import pallas as pl
from jax.experimental.pallas import tpu as pltpu


_LANES = 128
_SUBLANES = 8
# ~1.5 MiB per (3-channel, f32) input block: 3 * 131072 * 4 B
_MAX_BLOCK_PIX = 128 * 1024


def _round_up(x: int, m: int) -> int:
    return ((x + m - 1) // m) * m


def _ref_loss_kernel(obs_ref, prd_ref, mask_ref, sums_ref, counts_ref):
    # obs_ref / prd_ref blocks: (1, 3, TR, 128); mask_ref block: (TR, 128).
    o = obs_ref[0] * jnp.float32(30.0)            # (3, TR, 128)
    p = prd_ref[0] * jnp.float32(30.0)
    d = o - p
    e = d * d                                      # squared error (x30 scale)

    m = mask_ref[...] > jnp.float32(0.5)           # valid (ocean) pixels
    valid = jnp.logical_and(m[None, :, :], jnp.logical_not(jnp.isnan(e)))
    e_masked = jnp.where(valid, e, jnp.float32(0.0))

    # Reduce only over the sublane/tile-row axis; keep lane-dense (3, 128)
    # partials. The final (tiny) cross-lane reduction happens in the wrapper.
    sums_ref[0, 0] = jnp.sum(e_masked, axis=1)
    counts_ref[0, 0] = jnp.sum(valid.astype(jnp.float32), axis=1)


def ref_loss(obs: jax.Array, prd: jax.Array, landmask: jax.Array) -> jax.Array:
    """Pallas TPU forward pass of `ref_loss`."""
    obs = jnp.asarray(obs, jnp.float32)
    prd = jnp.asarray(prd, jnp.float32)
    assert obs.shape == prd.shape
    N, C, H, W = obs.shape
    assert C >= 3
    P = H * W

    # Only channels 0..2 are used -> never DMA dead channels.
    obs3 = obs[:, :3].reshape(N, 3, P)
    prd3 = prd[:, :3].reshape(N, 3, P)
    mask_f = jnp.where(landmask.reshape(P) == 0, jnp.float32(1.0), jnp.float32(0.0))

    # Lane-dense tiling of the flattened pixel axis.
    min_pix = _SUBLANES * _LANES                               # 1024
    block_pix = min(_MAX_BLOCK_PIX, _round_up(P, min_pix))
    padded_p = _round_up(P, block_pix)
    pad = padded_p - P
    if pad:
        obs3 = jnp.pad(obs3, ((0, 0), (0, 0), (0, pad)))
        prd3 = jnp.pad(prd3, ((0, 0), (0, 0), (0, pad)))
        mask_f = jnp.pad(mask_f, ((0, pad),))                  # padding is invalid

    rows = padded_p // _LANES
    tr = block_pix // _LANES                                   # multiple of 8
    num_chunks = padded_p // block_pix

    obs4 = obs3.reshape(N, 3, rows, _LANES)
    prd4 = prd3.reshape(N, 3, rows, _LANES)
    mask2 = mask_f.reshape(rows, _LANES)

    out_sd = jax.ShapeDtypeStruct((N, num_chunks, 3, _LANES), jnp.float32)

    cost = pl.CostEstimate(
        flops=int(7 * N * 3 * padded_p),
        transcendentals=0,
        bytes_accessed=int((2 * N * 3 + 1) * padded_p * 4),
    )

    sums, counts = pl.pallas_call(
        _ref_loss_kernel,
        out_shape=(out_sd, out_sd),
        grid_spec=pltpu.PrefetchScalarGridSpec(
            num_scalar_prefetch=0,
            grid=(N, num_chunks),
            in_specs=[
                pl.BlockSpec((1, 3, tr, _LANES), lambda b, j: (b, 0, j, 0)),
                pl.BlockSpec((1, 3, tr, _LANES), lambda b, j: (b, 0, j, 0)),
                pl.BlockSpec((tr, _LANES), lambda b, j: (j, 0)),
            ],
            out_specs=[
                pl.BlockSpec((1, 1, 3, _LANES), lambda b, j: (b, j, 0, 0)),
                pl.BlockSpec((1, 1, 3, _LANES), lambda b, j: (b, j, 0, 0)),
            ],
        ),
        compiler_params=pltpu.CompilerParams(
            dimension_semantics=("parallel", "parallel"),
            vmem_limit_bytes=32 * 1024 * 1024,
        ),
        cost_estimate=cost,
    )(obs4, prd4, mask2)

    # Tiny final reduction in JAX: nanmean per channel, then sum the 3 channels.
    sum_c = jnp.sum(sums, axis=(0, 1, 3))      # (3,)
    cnt_c = jnp.sum(counts, axis=(0, 1, 3))    # (3,)
    return jnp.sum(sum_c / cnt_c)


def _ref_loss_ref(obs, prd, landmask):
    """Pure-JAX reference matching the PyTorch module."""
    obs = obs.astype(jnp.float32)
    prd = prd.astype(jnp.float32)
    valid_pix = (landmask == 0)[None, :, :]

    def masked_nanmean(err_map):
        valid = jnp.logical_and(valid_pix, jnp.logical_not(jnp.isnan(err_map)))
        s = jnp.sum(jnp.where(valid, err_map, 0.0))
        c = jnp.sum(valid.astype(jnp.float32))
        return s / c

    u_o, v_o, sic_o = obs[:, 0] * 30.0, obs[:, 1] * 30.0, obs[:, 2] * 30.0
    u_p, v_p, sic_p = prd[:, 0] * 30.0, prd[:, 1] * 30.0, prd[:, 2] * 30.0
    err1 = masked_nanmean(jnp.square(u_o - u_p))
    err2 = masked_nanmean(jnp.square(v_o - v_p))
    err3 = masked_nanmean(jnp.square(sic_o - sic_p))
    return err1 + err2 + err3


if __name__ == "__main__":
    key = jax.random.PRNGKey(0)
    k_obs, k_prd = jax.random.split(key)
    N, C, H, W = 2, 4, 16, 16
    obs = jax.random.normal(k_obs, (N, C, H, W), dtype=jnp.float32)
    prd = jax.random.normal(k_prd, (N, C, H, W), dtype=jnp.float32)
    # A couple of NaNs to exercise the nanmean semantics.
    obs = obs.at[0, 0, 3, 5].set(jnp.nan)
    prd = prd.at[1, 2, 7, 9].set(jnp.nan)
    # Land mask: first 4 columns are land (non-zero), the rest is ocean (zero).
    landmask = jnp.zeros((H, W), dtype=jnp.int32).at[:, :4].set(1)

    out = jax.block_until_ready(ref_loss(obs, prd, landmask))
    ref = jax.block_until_ready(_ref_loss_ref(obs, prd, landmask))

    assert jnp.allclose(out, ref, rtol=1e-5, atol=1e-4), (out, ref)
    print("KERNEL_OK")
</pallas_src>

<mosaic_0001>
module attributes {stable_mosaic.version = 11 : i64} {
  func.func @_ref_loss_kernel(%arg0: i32, %arg1: i32, %arg2: memref<1x3x8x128xf32, #tpu.memory_space<vmem>>, %arg3: memref<1x3x8x128xf32, #tpu.memory_space<vmem>>, %arg4: memref<8x128xf32, #tpu.memory_space<vmem>>, %arg5: memref<1x1x3x128xf32, #tpu.memory_space<vmem>>, %arg6: memref<1x1x3x128xf32, #tpu.memory_space<vmem>>) attributes {dimension_semantics = [#tpu.dimension_semantics<parallel>, #tpu.dimension_semantics<parallel>], iteration_bounds = array<i64: 2, 1>, scalar_prefetch = 0 : i64, scratch_operands = 0 : i64, tpu.core_type = #tpu.core_type<tc>, window_params = [{transform_indices = @transform_0, window_bounds = array<i64: 1, 3, 8, 128>}, {transform_indices = @transform_1, window_bounds = array<i64: 1, 3, 8, 128>}, {transform_indices = @transform_2, window_bounds = array<i64: 8, 128>}, {transform_indices = @transform_3, window_bounds = array<i64: 1, 1, 3, 128>}, {transform_indices = @transform_4, window_bounds = array<i64: 1, 1, 3, 128>}]} {
    %c0 = arith.constant 0 : index
    %c0_0 = arith.constant 0 : index
    %c0_1 = arith.constant 0 : index
    %c0_2 = arith.constant 0 : index
    %0 = vector.load %arg2[%c0, %c0_0, %c0_1, %c0_2] : memref<1x3x8x128xf32, #tpu.memory_space<vmem>>, vector<1x3x8x128xf32>
    %1 = vector.shape_cast %0 : vector<1x3x8x128xf32> to vector<3x8x128xf32>
    %cst = arith.constant 3.000000e+01 : f32
    %2 = vector.broadcast %cst : f32 to vector<3x8x128xf32>
    %3 = arith.mulf %1, %2 : vector<3x8x128xf32>
    %c0_3 = arith.constant 0 : index
    %c0_4 = arith.constant 0 : index
    %c0_5 = arith.constant 0 : index
    %c0_6 = arith.constant 0 : index
    %4 = vector.load %arg3[%c0_3, %c0_4, %c0_5, %c0_6] : memref<1x3x8x128xf32, #tpu.memory_space<vmem>>, vector<1x3x8x128xf32>
    %5 = vector.shape_cast %4 : vector<1x3x8x128xf32> to vector<3x8x128xf32>
    %cst_7 = arith.constant 3.000000e+01 : f32
    %6 = vector.broadcast %cst_7 : f32 to vector<3x8x128xf32>
    %7 = arith.mulf %5, %6 : vector<3x8x128xf32>
    %8 = arith.subf %3, %7 : vector<3x8x128xf32>
    %9 = arith.mulf %8, %8 : vector<3x8x128xf32>
    %c0_8 = arith.constant 0 : index
    %c0_9 = arith.constant 0 : index
    %10 = vector.load %arg4[%c0_8, %c0_9] : memref<8x128xf32, #tpu.memory_space<vmem>>, vector<8x128xf32>
    %cst_10 = arith.constant 5.000000e-01 : f32
    %11 = vector.broadcast %cst_10 : f32 to vector<8x128xf32>
    %12 = arith.cmpf ogt, %10, %11 : vector<8x128xf32>
    %13 = vector.shape_cast %12 : vector<8x128xi1> to vector<1x8x128xi1>
    %14 = arith.cmpf one, %9, %9 : vector<3x8x128xf32>
    %cst_11 = arith.constant dense<true> : vector<3x8x128xi1>
    %15 = arith.xori %14, %cst_11 : vector<3x8x128xi1>
    %16 = vector.broadcast %13 : vector<1x8x128xi1> to vector<3x8x128xi1>
    %17 = arith.andi %16, %15 : vector<3x8x128xi1>
    %cst_12 = arith.constant 0.000000e+00 : f32
    %18 = vector.broadcast %cst_12 : f32 to vector<3x8x128xf32>
    %19 = arith.select %17, %9, %18 : vector<3x8x128xi1>, vector<3x8x128xf32>
    %cst_13 = arith.constant dense<0.000000e+00> : vector<3x128xf32>
    %20 = vector.multi_reduction <add>, %19, %cst_13 [1] : vector<3x8x128xf32> to vector<3x128xf32>
    %c0_14 = arith.constant 0 : index
    %c0_15 = arith.constant 0 : index
    %c0_16 = arith.constant 0 : index
    %c0_17 = arith.constant 0 : index
    %21 = vector.load %arg5[%c0_14, %c0_15, %c0_16, %c0_17] : memref<1x1x3x128xf32, #tpu.memory_space<vmem>>, vector<1x1x3x128xf32>
    %22 = vector.shape_cast %21 : vector<1x1x3x128xf32> to vector<3x128xf32>
    %23 = vector.shape_cast %20 : vector<3x128xf32> to vector<1x1x3x128xf32>
    tpu.vector_store %arg5[%c0_14, %c0_15, %c0_16, %c0_17], %23 {strides = array<i32>} : memref<1x1x3x128xf32, #tpu.memory_space<vmem>>, vector<1x1x3x128xf32>,
    %24 = arith.extui %17 : vector<3x8x128xi1> to vector<3x8x128xi32>
    %25 = arith.sitofp %24 : vector<3x8x128xi32> to vector<3x8x128xf32>
    %cst_18 = arith.constant dense<0.000000e+00> : vector<3x128xf32>
    %26 = vector.multi_reduction <add>, %25, %cst_18 [1] : vector<3x8x128xf32> to vector<3x128xf32>
    %c0_19 = arith.constant 0 : index
    %c0_20 = arith.constant 0 : index
    %c0_21 = arith.constant 0 : index
    %c0_22 = arith.constant 0 : index
    %27 = vector.load %arg6[%c0_19, %c0_20, %c0_21, %c0_22] : memref<1x1x3x128xf32, #tpu.memory_space<vmem>>, vector<1x1x3x128xf32>
    %28 = vector.shape_cast %27 : vector<1x1x3x128xf32> to vector<3x128xf32>
    %29 = vector.shape_cast %26 : vector<3x128xf32> to vector<1x1x3x128xf32>
    tpu.vector_store %arg6[%c0_19, %c0_20, %c0_21, %c0_22], %29 {strides = array<i32>} : memref<1x1x3x128xf32, #tpu.memory_space<vmem>>, vector<1x1x3x128xf32>,
    return
  }
  func.func @transform_0(%arg0: i32, %arg1: i32) -> (i32, i32, i32, i32) {
    %c0_i32 = arith.constant 0 : i32
    %c0_i32_0 = arith.constant 0 : i32
    %c0_i32_1 = arith.constant 0 : i32
    return %arg0, %c0_i32, %arg1, %c0_i32_0 : i32, i32, i32, i32
  }
  func.func @transform_1(%arg0: i32, %arg1: i32) -> (i32, i32, i32, i32) {
    %c0_i32 = arith.constant 0 : i32
    %c0_i32_0 = arith.constant 0 : i32
    %c0_i32_1 = arith.constant 0 : i32
    return %arg0, %c0_i32, %arg1, %c0_i32_0 : i32, i32, i32, i32
  }
  func.func @transform_2(%arg0: i32, %arg1: i32) -> (i32, i32) {
    %c0_i32 = arith.constant 0 : i32
    %c0_i32_0 = arith.constant 0 : i32
    return %arg1, %c0_i32 : i32, i32
  }
  func.func @transform_3(%arg0: i32, %arg1: i32) -> (i32, i32, i32, i32) {
    %c0_i32 = arith.constant 0 : i32
    %c0_i32_0 = arith.constant 0 : i32
    %c0_i32_1 = arith.constant 0 : i32
    return %arg0, %arg1, %c0_i32, %c0_i32_0 : i32, i32, i32, i32
  }
  func.func @transform_4(%arg0: i32, %arg1: i32) -> (i32, i32, i32, i32) {
    %c0_i32 = arith.constant 0 : i32
    %c0_i32_0 = arith.constant 0 : i32
    %c0_i32_1 = arith.constant 0 : i32
    return %arg0, %arg1, %c0_i32, %c0_i32_0 : i32, i32, i32, i32
  }
}

</mosaic_0001>

<bundles_post_ra>
// kernel: tpu_custom_call.1
= control target key start
LH: loop header
LB: loop body
LE: loop exit
PB: predicated region body
PF: predicated region fallthrough
CT: control target
= control target key end

     0   :  { %10 = vsyncpa [#allocation3], 0  ;;  %s1081_s0 = inlined_call_operand.hbm [shape: f32[2,3,8,128], index: 0, kind: input, shape index: {}]   ;;  %s1082_s1 = inlined_call_operand.hbm [shape: f32[2,3,8,128], index: 1, kind: input, shape index: {}]   ;;  %s1083_s2 = inlined_call_operand.hbm [shape: f32[8,128], index: 2, kind: input, shape index: {}]   ;;  %s1084_s3 = inlined_call_operand.vmem [shape: f32[2,1,3,128], index: 3, kind: output, shape index: {0}]   ;;  %s1085_s4 = inlined_call_operand.vmem [shape: f32[2,1,3,128], index: 4, kind: output, shape index: {1}]  }
   0x1   :  { %12 = vsyncpa [#allocation3 + $0x1], 0 }
   0x2   :  { %13 = vsyncpa [#allocation5], 0 }
   0x3   :  { %15 = vsyncpa [#allocation5 + $0x1], 0  ;;  %s850_s15 = smov 0   ;;  %s852_s16 = smov 0  }
   0x4   :  { %s854_s17 = smov 0   ;;  %s856_s18 = smov 0  }
   0x5   :  { %s858_s19 = smov 0   ;;  %s860_s20 = smov 0  }
   0x6 LB: > { %s1091_s21 = sadd.s32 4294967295, %s816_s20   ;;  %s42_s22 = sadd.s32 1, %s804_s17  ;;  %s816_s20 = sphi %s860_s20, %s21_s20   ;;  %s812_s19 = sphi %s858_s19, %s1108_s19   ;;  %s808_s18 = sphi %s856_s18, %s1107_s18   ;;  %s804_s17 = sphi %s854_s17, %s1106_s17   ;;  %s800_s16 = sphi %s852_s16, %s1105_s16   ;;  %s796_s15 = sphi %s850_s15, %s1104_s15  }
   0x7   : > { %p49_p0 = scmp.ne.s32.totalorder %s804_s17, %s800_s16  ;;  %p50_p1 = scmp.eq.s32.totalorder %s816_s20, 0 }
   0x8   : > { %p55_p2 = scmp.ne.s32.totalorder %s800_s16, %s796_s15  ;;  %p886_p3 = scmp.eq.s32.totalorder %s1091_s21, 0 }
   0x9   : > { %p51_p4 = por %p50_p1, %p49_p0  ;;  %p576_p5 = scmp.ge.s32.totalorder %s816_s20, 1 }
   0xa   : > { %s1092_s23 = scalar_select %p886_p3, 1, 0 }
   0xb   : > { %p893_p6 = por %p886_p3, %p55_p2  ;;  %p176_p7 = scmp.lt.s32.totalorder %s816_s20, 3 }
   0xc   : > { %s818_s26 = smov [#allocation6]   ;;  %p615_p10 = scmp.lt.s32.totalorder %s816_s20, 2 }
   0xd   : > { %s1093_s24 = scalar_select %p893_p6, 1, 0 }
   0xe   : > { %p898_p8 = pnand %p576_p5, %p176_p7  ;;  %s191_s27 = sshll.u32 %s818_s26, 4  ;;  %s192_s27 = int_to_ptr.vmem [resolvable:$true] %s191_s27 }
   0xf   : > { %s202_s28 = sand.u32 1, %s804_s17   ;;  %p912_p12 = pnand %p615_p10, %p51_p4 }
  0x10   : > { %s1094_s25 = scalar_select %p898_p8, 1, 0 }
  0x11   : > { %p603_p9 = pneg %p898_p8  ;;  %s670_s7 = scalar_lea.hbm %s1083_s2, 128 }
  0x12   : > { %s1096_s30 = scalar_select %p912_p12, 1, 0 }
  0x13   : > { %p908_p11 = pnand %p603_p9, %p886_p3  ;;  %p671_p13 = scmp.ne.s32.totalorder %s1083_s2, %s670_s7 }
  0x14   : > { %p677_p5 = scmp.lt.u32.totalorder %s670_s7, %s1083_s2 }
  0x15   : > { %p672_p0 = pneg %p908_p11 }
  0x17   : > { %p673_p1 = pnand %p672_p0, %p671_p13 }
  0x19   : > { %p674_p2 = pneg %p673_p1 }
  0x1b   : > { %p679_p4 = pnand %p677_p5, %p674_p2 }
  0x1d   : > { %682 = shalt.err (!%p679_p4)
}
  0x1e   : > { %s683_s12 = scalar_lea.vmem %s192_s27, 128  ;;  %p691_p3 = scmp.lt.s32.totalorder %s192_s27, %s192_s27 }
  0x1f   : > { %p684_p7 = scmp.ne.s32.totalorder %s192_s27, %s683_s12  ;;  %p692_p6 = scmp.lt.s32.totalorder %s683_s12, %s683_s12 }
  0x21   : > { %p686_p9 = pnand %p684_p7, %p672_p0  ;;  %p693_p8 = por %p692_p6, %p691_p3 }
  0x23   : > { %p687_p10 = pneg %p686_p9 }
  0x25   : > { %p694_p12 = pnand %p693_p8, %p687_p10 }
  0x27   : > { %697 = shalt.err (!%p694_p12)
}
  0x28   : > { %606 = dma.hbm_to_vmem [thread:$0]  (!%p908_p11), %s1083_s2, 128, %s192_s27, [#allocation5]  }
  0x29   : > { %s33_s15 = sadd.s32 1, %s812_s19  ;;  %s935_s26 = smul.u32 24, %s202_s28 }
  0x2a   : > { %p35_p3 = scmp.ge.s32.totalorder %s33_s15, 2  ;;  %s591_s5 = smul.u32 384, %s812_s19 }
  0x2b   : > { %s206_s27 = scalar_lea.vmem [#allocation2], %s935_s26  ;;  %s958_s11 = scalar_lea.sflag [#allocation3], %s202_s28 }
  0x2c   : > { %s1110_s15 = smov (%p35_p3, %s33_s15), 0  ;;  %s945_s7 = scalar_lea.hbm %s1081_s0, %s591_s5 }
  0x2d   : > { %s214_s8 = sshll.u32 %s206_s27, 4  ;;  %s37_s9 = ssub.s32 %s812_s19, %s1110_s15  ;;  %s950_s8 = int_to_ptr.vmem [resolvable:$true] %s214_s8 }
  0x2e   : > { %p952_p6 = scmp.eq.s32.totalorder %s37_s9, 0  ;;  %s698_s12 = scalar_lea.hbm %s945_s7, 384 }
  0x2f   : > { %p699_p8 = scmp.ne.s32.totalorder %s945_s7, %s698_s12  ;;  %p1098_p11 = scmp.ne.s32.totalorder %s1096_s30, 0 }
  0x30   : > { %s703_s29 = scalar_lea.hbm %s1081_s0, 768  ;;  %p704_p1 = scmp.lt.u32.totalorder %s945_s7, %s1081_s0 }
  0x31   : > { %p700_p12 = pneg %p1098_p11  ;;  %p705_p2 = scmp.lt.u32.totalorder %s703_s29, %s698_s12 }
  0x32   : > { %p707_p4 = scmp.lt.u32.totalorder %s698_s12, %s945_s7 }
  0x33   : > { %p701_p13 = pnand %p700_p12, %p699_p8  ;;  %p706_p5 = por %p705_p2, %p704_p1 }
  0x35   : > { %p702_p0 = pneg %p701_p13  ;;  %p708_p7 = por %p707_p4, %p706_p5 }
  0x37   : > { %p709_p9 = pnand %p708_p7, %p702_p0 }
  0x39   : > { %712 = shalt.err (!%p709_p9)
}
  0x3a   : > { %s713_s28 = scalar_lea.vmem %s950_s8, 384  ;;  %s819_s9 = smov [#allocation2]  }
  0x3b   : > { %p714_p10 = scmp.ne.s32.totalorder %s950_s8, %s713_s28  ;;  %s718_s13 = sshll.u32 %s819_s9, 4  ;;  %s719_s13 = int_to_ptr.vmem [resolvable:$false] %s718_s13 }
  0x3c   : > { %s720_s14 = scalar_lea.vmem %s719_s13, 768  ;;  %p721_p13 = scmp.lt.s32.totalorder %s950_s8, %s719_s13 }
  0x3d   : > { %p716_p3 = pnand %p714_p10, %p700_p12  ;;  %p722_p1 = scmp.lt.s32.totalorder %s720_s14, %s713_s28 }
  0x3f   : > { %p717_p8 = pneg %p716_p3  ;;  %p723_p2 = por %p722_p1, %p721_p13 }
  0x41   : > { %p724_p5 = pnand %p723_p2, %p717_p8 }
  0x43   : > { %727 = shalt.err (!%p724_p5)
}
  0x44   : > { %s820_s12 = smov 128   ;;  %s821_s29 = smov 8  }
  0x45   : > { %610 = dma.hbm_to_vmem [thread:$0]  (!%p1098_p11), %s945_s7, 384, %s950_s8, %s958_s11, %s820_s12, %s820_s12, %s821_s29  }
  0x46   : > { %s994_s6 = scalar_select %p952_p6, %s804_s17, %s42_s22  }
  0x47   : > { %s224_s27 = sand.u32 1, %s816_s20   ;;  %s1002_s13 = scalar_lea.hbm %s1082_s1, %s591_s5 }
  0x48   : > { %s228_s14 = scalar_lea.vmem [#allocation4], %s935_s26  ;;  %s1007_s7 = scalar_lea.sflag [#allocation5], %s224_s27 }
  0x49   : > { %s236_s21 = sshll.u32 %s228_s14, 4  ;;  %s728_s8 = scalar_lea.hbm %s1002_s13, 384  ;;  %s1005_s21 = int_to_ptr.vmem [resolvable:$true] %s236_s21 }
  0x4a   : > { %p729_p6 = scmp.ne.s32.totalorder %s1002_s13, %s728_s8  ;;  %s733_s5 = scalar_lea.hbm %s1082_s1, 768 }
  0x4b   : > { %p734_p7 = scmp.lt.u32.totalorder %s1002_s13, %s1082_s1  ;;  %p735_p9 = scmp.lt.u32.totalorder %s733_s5, %s728_s8 }
  0x4c   : > { %p731_p0 = pnand %p729_p6, %p700_p12  ;;  %p737_p3 = scmp.lt.u32.totalorder %s728_s8, %s1002_s13 }
  0x4d   : > { %p736_p10 = por %p735_p9, %p734_p7 }
  0x4e   : > { %p732_p4 = pneg %p731_p0 }
  0x4f   : > { %p738_p8 = por %p737_p3, %p736_p10 }
  0x51   : > { %p739_p13 = pnand %p738_p8, %p732_p4 }
  0x53   : > { %742 = shalt.err (!%p739_p13)
}
  0x54   : > { %s743_s26 = scalar_lea.vmem %s1005_s21, 384  ;;  %s822_s27 = smov [#allocation4]  }
  0x55   : > { %p744_p1 = scmp.ne.s32.totalorder %s1005_s21, %s743_s26  ;;  %s748_s9 = sshll.u32 %s822_s27, 4  ;;  %s749_s9 = int_to_ptr.vmem [resolvable:$false] %s748_s9 }
  0x56   : > { %s750_s14 = scalar_lea.vmem %s749_s9, 768  ;;  %p751_p6 = scmp.lt.s32.totalorder %s1005_s21, %s749_s9 }
  0x57   : > { %p746_p2 = pnand %p744_p1, %p700_p12  ;;  %p752_p0 = scmp.lt.s32.totalorder %s750_s14, %s743_s26 }
  0x59   : > { %p747_p5 = pneg %p746_p2  ;;  %p753_p7 = por %p752_p0, %p751_p6 }
  0x5b   : > { %p754_p9 = pnand %p753_p7, %p747_p5 }
  0x5d   : > { %757 = shalt.err (!%p754_p9)
}
  0x5e   : > { %613 = dma.hbm_to_vmem [thread:$0]  (!%p1098_p11), %s1002_s13, 384, %s1005_s21, %s1007_s7, %s820_s12, %s820_s12, %s821_s29  }
  0x5f   : > { %p1099_p12 = scmp.ne.s32.totalorder %s1094_s25, 0 }
  0x60   : > { %s250_s8 = sand.u32 (!%p1099_p12), 1, %s800_s16   ;;  %p1100_p4 = scmp.ne.s32.totalorder (!%p1099_p12), %s1093_s24, 0 }
  0x61   : > { %248 = sbr.rel (%p1099_p12) target bundleno = 142 (0x8e), region = 32  ;;  %s251_s10 = scalar_lea.sflag (!%p1099_p12), [#allocation3], %s250_s8 }
  0x62   : > { %s594_s22 = smul.u32 (!%p1099_p12), 24, %s250_s8 }
  0x64   : > { %s254_s5 = scalar_lea.vmem (!%p1099_p12), [#allocation2], %s594_s22 }
  0x68   : > { %783 = dma.done.wait (%p1100_p4), %s251_s10, 384  }
  0x69   : > { %785 = vsyncadd (%p1100_p4), %s251_s10, 4294966912  ;;  %s1101_s30 = sadd.s32 4294967295, %s816_s20   ;;  %s263_s21 = scalar_lea.vmem [#allocation4], %s594_s22 }
  0x6a   : > { %s259_s11 = sand.u32 1, %s1101_s30  }
  0x6b   : > { %s260_s28 = scalar_lea.sflag [#allocation5], %s259_s11 }
  0x6c   : > { %787 = dma.done.wait (%p1100_p4), %s260_s28, 384  }
  0x6d   : > { %789 = vsyncadd (%p1100_p4), %s260_s28, 4294966912  ;;  %p1102_p11 = scmp.ne.s32.totalorder %s1092_s23, 0 }
  0x6f   : > { %791 = dma.done.wait (%p1102_p11), [#allocation5], 128  }
  0x70   : > { %793 = vsyncadd (%p1102_p11), [#allocation5], 4294967168  ;;  %v320_v0 = vld [vmem:[%s254_s5] sm:$0xff]  ;;  %v321_v1 = vld [vmem:[%s254_s5 + $0x8] sm:$0xff]  ;;  %vm823_vm4 = vmmov 1   ;;  %v824_v20 = vmov 0.0  }
  0x71   : > { %v322_v2 = vld [vmem:[%s254_s5 + $0x10] sm:$0xff]  ;;  %v323_v3 = vmul.f32 30.0, %v320_v0  ;;  %v324_v4 = vmul.f32 30.0, %v321_v1  ;;  %v327_v7 = vld [vmem:[%s263_s21 + $0x8] sm:$0xff]  ;;  %v328_v8 = vld [vmem:[%s263_s21 + $0x10] sm:$0xff]  ;;  %p306_p10 = scmp.lt.s32.totalorder %s808_s18, 1 }
  0x72   : > { %v325_v5 = vmul.f32 30.0, %v322_v2  ;;  %v326_v6 = vld [vmem:[%s263_s21] sm:$0xff]  ;;  %v330_v10 = vmul.f32 30.0, %v327_v7  ;;  %v331_v11 = vmul.f32 30.0, %v328_v8  ;;  %v338_v18 = vld [vmem:[#allocation6] sm:$0xff]  ;;  %vm375_vm11 = vcmask 1041409  }
  0x73   : > { %v329_v9 = vmul.f32 30.0, %v326_v6  ;;  %vm339_vm3 = vcmp.gt.f32.partialorder %v338_v18, 0.5  ;;  %s1112_s18 = smov (!%p306_p10, %s808_s18), 1  ;;  %vm377_vm12 = vcmask 1042434  }
  0x74   : > { %v333_v13 = vsub.f32 %v324_v4, %v330_v10  ;;  %v334_v14 = vsub.f32 %v325_v5, %v331_v11  ;;  %s583_s23 = sshll.u32 %s1112_s18, 2 }
  0x75   : > { %v332_v12 = vsub.f32 %v323_v3, %v329_v9  ;;  %s312_s12 = scalar_lea.vmem %s1084_s3, %s583_s23  ;;  %s319_s7 = scalar_lea.vmem %s1085_s4, %s583_s23 }
  0x76   : > { %v336_v16 = vmul.f32 %v333_v13, %v333_v13  ;;  %v337_v17 = vmul.f32 %v334_v14, %v334_v14 }
  0x77   : > { %v335_v15 = vmul.f32 %v332_v12, %v332_v12 }
  0x78   : > { %vm341_vm1 = vcmp.ne.f32.partialorder %v336_v16, %v336_v16  ;;  %vm342_vm2 = vcmp.ne.f32.partialorder %v337_v17, %v337_v17 }
  0x79   : > { %vm340_vm0 = vcmp.ne.f32.partialorder %v335_v15, %v335_v15  ;;  %vm344_vm6 = vmxor %vm341_vm1, %vm823_vm4 }
  0x7a   : > { %vm343_vm5 = vmxor %vm340_vm0, %vm823_vm4 }
  0x7b   : > { %vm345_vm7 = vmxor %vm342_vm2, %vm823_vm4 }
  0x7c   : > { %vm348_vm8 = vmand %vm339_vm3, %vm343_vm5 }
  0x7d   : > { %vm349_vm9 = vmand %vm339_vm3, %vm344_vm6  ;;  %v351_v19 = vsel %vm348_vm8, %v335_v15, 0.0  ;;  %v585_v21 = vsel %vm348_vm8, 1.0, %v824_v20 }
  0x7e   : > { %vm350_vm10 = vmand %vm339_vm3, %vm345_vm7  ;;  %v352_v22 = vsel %vm349_vm9, %v336_v16, 0.0  ;;  %v354_v23 = vrot.slane %v351_v19, 4  ;;  %v586_v24 = vsel %vm349_vm9, 1.0, %v824_v20  ;;  %v387_v25 = vrot.slane %v585_v21, 4 }
  0x7f   : > { %v353_v26 = vsel %vm350_vm10, %v337_v17, 0.0  ;;  %v360_v27 = vrot.slane %v352_v22, 4  ;;  %v587_v28 = vsel %vm350_vm10, 1.0, %v824_v20  ;;  %v393_v29 = vrot.slane %v586_v24, 4 }
  0x80   : > { %v355_v30 = vadd.f32 %v354_v23, %v351_v19  ;;  %v366_v31 = vrot.slane %v353_v26, 4  ;;  %v388_v32 = vadd.f32 %v585_v21, %v387_v25  ;;  %v399_v33 = vrot.slane %v587_v28, 4 }
  0x81   : > { %v361_v34 = vadd.f32 %v360_v27, %v352_v22  ;;  %v394_v35 = vadd.f32 %v586_v24, %v393_v29 }
  0x82   : > { %v356_v36 = vrot.slane %v355_v30, 2  ;;  %v367_v37 = vadd.f32 %v366_v31, %v353_v26  ;;  %v389_v38 = vrot.slane %v388_v32, 2  ;;  %v400_v39 = vadd.f32 %v587_v28, %v399_v33 }
  0x83   : > { %v362_v40 = vrot.slane %v361_v34, 2  ;;  %v395_v41 = vrot.slane %v394_v35, 2 }
  0x84   : > { %v357_v42 = vadd.f32 %v356_v36, %v355_v30  ;;  %v368_v43 = vrot.slane %v367_v37, 2  ;;  %v390_v44 = vadd.f32 %v389_v38, %v388_v32  ;;  %v401_v45 = vrot.slane %v400_v39, 2 }
  0x85   : > { %v363_v46 = vadd.f32 %v362_v40, %v361_v34  ;;  %v396_v47 = vadd.f32 %v395_v41, %v394_v35 }
  0x86   : > { %v358_v48 = vrot.slane %v357_v42, 1  ;;  %v369_v49 = vadd.f32 %v368_v43, %v367_v37  ;;  %v391_v50 = vrot.slane %v390_v44, 1  ;;  %v402_v51 = vadd.f32 %v401_v45, %v400_v39 }
  0x87   : > { %v364_v52 = vrot.slane %v363_v46, 1  ;;  %v397_v53 = vrot.slane %v396_v47, 1 }
  0x88   : > { %v359_v54 = vadd.f32 %v358_v48, %v357_v42  ;;  %v370_v55 = vrot.slane %v369_v49, 1  ;;  %v392_v56 = vadd.f32 %v391_v50, %v390_v44  ;;  %v403_v57 = vrot.slane %v402_v51, 1 }
  0x89   : > { %v365_v58 = vadd.f32 %v364_v52, %v363_v46  ;;  %v398_v59 = vadd.f32 %v397_v53, %v396_v47 }
  0x8a   : > { %v371_v60 = vadd.f32 %v370_v55, %v369_v49  ;;  %v404_v61 = vadd.f32 %v403_v57, %v402_v51 }
  0x8b   : > { %v376_v62 = vsel %vm375_vm11, %v365_v58, %v359_v54  ;;  %v408_v63 = vsel %vm375_vm11, %v398_v59, %v392_v56 }
  0x8c   : > { %v378_v0 = vsel %vm377_vm12, %v371_v60, %v376_v62  ;;  %v409_v1 = vsel %vm377_vm12, %v404_v61, %v408_v63 }
  0x8d   : > { %380 = vst [vmem:[%s312_s12] sm:$0x7] %v378_v0  ;;  %411 = vst [vmem:[%s319_s7] sm:$0x7] %v409_v1 }
  0x8e PF: > { %s21_s20 = sadd.s32 1, %s816_s20   ;;  %s1103_s26 = smov %s1110_s15 }
  0x8f   : > { %p18_p3 = scmp.ge.s32.totalorder %s21_s20, 4   ;;  %s1104_s15 = smov %s800_s16 }
  0x90   : > { %s1105_s16 = smov %s804_s17  ;;  %s1106_s17 = smov %s994_s6 }
  0x91   : > { %s1107_s18 = smov %s812_s19  ;;  %s1108_s19 = smov %s1103_s26 }
  0x92   :  { %20 = sbr.rel (!%p18_p3) target bundleno = 6 (0x6), region = 102 }
  0x99   :  { %457 = vsyncpa [#allocation3], 1 }
  0x9a   :  { %459 = vsyncpa [#allocation3 + $0x1], 1 }
  0x9b   :  { %460 = vsyncpa [#allocation5], 1 }
  0x9c   :  { %462 = vsyncpa [#allocation5 + $0x1], 1 }

</bundles_post_ra>
